<compile_context>
chip_gen: v5e
topology: v5e:2x2
jax: 0.10.0
libtpu: 0.0.40
codegen_flags: <defaults>
</compile_context>

<pallas_src>
import functools
import math

import jax
import jax.numpy as jnp
from jax.experimental import pallas as pl
from jax.experimental.pallas import tpu as pltpu


# ----------------------------------------------------------------------------
# radix > 1 : grouped softmax with layout permutation
# ----------------------------------------------------------------------------
def _rsoftmax_kernel(x_ref, o_ref, *, radix, rchan):
    # x_ref: (bt, cardinality, radix * rchan)  input strip, flat (c, r, j) order
    # o_ref: (bt, radix, cardinality, rchan)   output strip, (r, c, j) order
    xs = [x_ref[:, :, pl.ds(r * rchan, rchan)].astype(jnp.float32)
          for r in range(radix)]                       # radix x (bt, card, rchan)
    m = xs[0]
    for r in range(1, radix):
        m = jnp.maximum(m, xs[r])                      # max over radix (stability)
    es = [jnp.exp(v - m) for v in xs]                  # EUP
    s = es[0]
    for r in range(1, radix):
        s = s + es[r]
    inv = pl.reciprocal(s, approx=False)               # exact 1/denominator
    for r in range(radix):
        # indexed store realizes the (cardinality, radix) transpose for free
        o_ref[:, r, :, :] = (es[r] * inv).astype(o_ref.dtype)


# ----------------------------------------------------------------------------
# radix == 1 : elementwise sigmoid
# ----------------------------------------------------------------------------
def _sigmoid_kernel(x_ref, o_ref):
    x = x_ref[...].astype(jnp.float32)
    o_ref[...] = pl.reciprocal(1.0 + jnp.exp(-x), approx=False).astype(o_ref.dtype)


def _batch_tile(batch, feat, dtype_bytes):
    """Pick a batch strip so double-buffered I/O + f32 intermediates fit VMEM."""
    budget = 8 * 1024 * 1024                 # conservative vs 16/32 MiB scoped default
    # in + out blocks (double-buffered) in io dtype, plus ~3x f32 intermediates
    per_row = feat * (4 * dtype_bytes + 3 * 4)
    bt = max(1, budget // max(per_row, 1))
    bt = min(bt, 1024)                       # keep per-step padding/overhead sane
    if bt >= batch:
        return batch
    if bt >= 8:
        bt = (bt // 8) * 8                   # sublane-friendly strips
    return max(1, min(bt, batch))


def rsoftmax_pallas(x, radix, cardinality):
    B = x.shape[0]
    F = math.prod(x.shape[1:])
    dtype_bytes = jnp.dtype(x.dtype).itemsize
    bt = _batch_tile(B, F, dtype_bytes)

    if radix == 1:
        xf = x.reshape(B, F)                           # contiguous (free) reshape
        out = pl.pallas_call(
            _sigmoid_kernel,
            out_shape=jax.ShapeDtypeStruct((B, F), x.dtype),
            grid=(pl.cdiv(B, bt),),
            in_specs=[pl.BlockSpec((bt, F), lambda i: (i, 0))],
            out_specs=pl.BlockSpec((bt, F), lambda i: (i, 0)),
            compiler_params=pltpu.CompilerParams(
                dimension_semantics=("parallel",)),
        )(xf)
        return out.reshape(x.shape)                    # radix==1 keeps input shape

    assert F % (radix * cardinality) == 0, (F, radix, cardinality)
    rchan = F // (radix * cardinality)

    xv = x.reshape(B, cardinality, radix * rchan)      # contiguous (free) reshape
    kernel = functools.partial(_rsoftmax_kernel, radix=radix, rchan=rchan)
    out4 = pl.pallas_call(
        kernel,
        out_shape=jax.ShapeDtypeStruct((B, radix, cardinality, rchan), x.dtype),
        grid=(pl.cdiv(B, bt),),
        in_specs=[pl.BlockSpec((bt, cardinality, radix * rchan),
                               lambda i: (i, 0, 0))],
        out_specs=pl.BlockSpec((bt, radix, cardinality, rchan),
                               lambda i: (i, 0, 0, 0)),
        compiler_params=pltpu.CompilerParams(
            dimension_semantics=("parallel",)),
    )(xv)
    return out4.reshape(B, F)                          # flat (radix, card, chan) order


# ----------------------------------------------------------------------------
# Module port
# ----------------------------------------------------------------------------
class rSoftMaxPallas:
    def __init__(self, radix, cardinality):
        self.radix = radix
        self.cardinality = cardinality

    def __call__(self, x):
        return rsoftmax_pallas(x, self.radix, self.cardinality)

    # Pure-JAX reference (for correctness checking only).
    def reference(self, x):
        B = x.shape[0]
        if self.radix > 1:
            x4 = x.reshape(B, self.cardinality, self.radix, -1)
            x4 = jnp.transpose(x4, (0, 2, 1, 3))
            x4 = jax.nn.softmax(x4, axis=1)
            return x4.reshape(B, -1)
        return jax.nn.sigmoid(x)


if __name__ == "__main__":
    key = jax.random.PRNGKey(0)
    k0, k1 = jax.random.split(key)

    # radix > 1 path: B=2, cardinality=4, radix=2, 4 channels per (card, radix)
    # group -> 32 total features, presented NCHW-style as (B, 32, 1, 1).
    B, cardinality, radix, rchan = 2, 4, 2, 4
    C = cardinality * radix * rchan
    x = jax.random.normal(k0, (B, C, 1, 1), dtype=jnp.float32)

    mod = rSoftMaxPallas(radix=radix, cardinality=cardinality)
    out = jax.block_until_ready(mod(x))
    ref = jax.block_until_ready(mod.reference(x))
    assert out.shape == (B, C), out.shape
    max_err = float(jnp.max(jnp.abs(out - ref)))
    assert jnp.allclose(out, ref, atol=1e-5, rtol=1e-5), f"max_err={max_err}"

    # radix == 1 path: plain sigmoid, shape preserved.
    mod1 = rSoftMaxPallas(radix=1, cardinality=1)
    x1 = jax.random.normal(k1, (B, 8, 2, 2), dtype=jnp.float32)
    out1 = jax.block_until_ready(mod1(x1))
    ref1 = jax.block_until_ready(mod1.reference(x1))
    assert out1.shape == x1.shape, out1.shape
    max_err1 = float(jnp.max(jnp.abs(out1 - ref1)))
    assert jnp.allclose(out1, ref1, atol=1e-5, rtol=1e-5), f"max_err={max_err1}"

    print("KERNEL_OK")
</pallas_src>

<mosaic_0001>
module attributes {stable_mosaic.version = 11 : i64} {
  func.func @_rsoftmax_kernel(%arg0: i32, %arg1: memref<2x4x8xf32, #tpu.memory_space<vmem>>, %arg2: memref<2x2x4x4xf32, #tpu.memory_space<vmem>>) attributes {dimension_semantics = [#tpu.dimension_semantics<parallel>], iteration_bounds = array<i64: 1>, scalar_prefetch = 0 : i64, scratch_operands = 0 : i64, tpu.core_type = #tpu.core_type<tc>, window_params = [{transform_indices = @transform_0, window_bounds = array<i64: 2, 4, 8>}, {transform_indices = @transform_1, window_bounds = array<i64: 2, 2, 4, 4>}]} {
    %c0 = arith.constant 0 : index
    %c0_0 = arith.constant 0 : index
    %c0_1 = arith.constant 0 : index
    %0 = vector.load %arg1[%c0, %c0_0, %c0_1] : memref<2x4x8xf32, #tpu.memory_space<vmem>>, vector<2x4x4xf32>
    %c0_2 = arith.constant 0 : index
    %c0_3 = arith.constant 0 : index
    %c4 = arith.constant 4 : index
    %1 = vector.load %arg1[%c0_2, %c0_3, %c4] : memref<2x4x8xf32, #tpu.memory_space<vmem>>, vector<2x4x4xf32>
    %2 = arith.maximumf %0, %1 : vector<2x4x4xf32>
    %3 = arith.subf %0, %2 : vector<2x4x4xf32>
    %4 = math.exp %3 : vector<2x4x4xf32>
    %5 = arith.subf %1, %2 : vector<2x4x4xf32>
    %6 = math.exp %5 : vector<2x4x4xf32>
    %7 = arith.addf %4, %6 : vector<2x4x4xf32>
    %8 = tpu.reciprocal %7 : vector<2x4x4xf32> -> vector<2x4x4xf32>
    %9 = arith.mulf %4, %8 : vector<2x4x4xf32>
    %c0_4 = arith.constant 0 : index
    %c0_5 = arith.constant 0 : index
    %c0_6 = arith.constant 0 : index
    %c0_7 = arith.constant 0 : index
    %10 = vector.load %arg2[%c0_4, %c0_5, %c0_6, %c0_7] : memref<2x2x4x4xf32, #tpu.memory_space<vmem>>, vector<2x1x4x4xf32>
    %11 = vector.shape_cast %10 : vector<2x1x4x4xf32> to vector<2x4x4xf32>
    %12 = vector.shape_cast %9 : vector<2x4x4xf32> to vector<2x1x4x4xf32>
    tpu.vector_store %arg2[%c0_4, %c0_5, %c0_6, %c0_7], %12 {strides = array<i32>} : memref<2x2x4x4xf32, #tpu.memory_space<vmem>>, vector<2x1x4x4xf32>,
    %13 = arith.mulf %6, %8 : vector<2x4x4xf32>
    %c0_8 = arith.constant 0 : index
    %c1 = arith.constant 1 : index
    %c0_9 = arith.constant 0 : index
    %c0_10 = arith.constant 0 : index
    %14 = vector.load %arg2[%c0_8, %c1, %c0_9, %c0_10] : memref<2x2x4x4xf32, #tpu.memory_space<vmem>>, vector<2x1x4x4xf32>
    %15 = vector.shape_cast %14 : vector<2x1x4x4xf32> to vector<2x4x4xf32>
    %16 = vector.shape_cast %13 : vector<2x4x4xf32> to vector<2x1x4x4xf32>
    tpu.vector_store %arg2[%c0_8, %c1, %c0_9, %c0_10], %16 {strides = array<i32>} : memref<2x2x4x4xf32, #tpu.memory_space<vmem>>, vector<2x1x4x4xf32>,
    return
  }
  func.func @transform_0(%arg0: i32) -> (i32, i32, i32) {
    %c0_i32 = arith.constant 0 : i32
    %c0_i32_0 = arith.constant 0 : i32
    %c0_i32_1 = arith.constant 0 : i32
    return %arg0, %c0_i32, %c0_i32_0 : i32, i32, i32
  }
  func.func @transform_1(%arg0: i32) -> (i32, i32, i32, i32) {
    %c0_i32 = arith.constant 0 : i32
    %c0_i32_0 = arith.constant 0 : i32
    %c0_i32_1 = arith.constant 0 : i32
    %c0_i32_2 = arith.constant 0 : i32
    return %arg0, %c0_i32, %c0_i32_0, %c0_i32_1 : i32, i32, i32, i32
  }
}

</mosaic_0001>

<bundles_post_ra>
// kernel: tpu_custom_call.1
= control target key start
LH: loop header
LB: loop body
LE: loop exit
PB: predicated region body
PF: predicated region fallthrough
CT: control target
= control target key end

     0   :  { %6 = vsyncpa [#allocation3], 0  ;;  %s250_s0 = inlined_call_operand.hbm [shape: f32[2,4,8], index: 0, kind: input, shape index: {}]   ;;  %s251_s1 = inlined_call_operand.hbm [shape: f32[2,2,4,4], index: 1, kind: output, shape index: {}]  }
   0x1   :  { %7 = vsyncpa [#allocation4], 0  ;;  %s12_s8 = sshll.u32 %s250_s0, 4  ;;  %s209_s9 = smov [#allocation2]   ;;  %s13_s8 = int_to_ptr.hbm [resolvable:$true] %s12_s8 }
   0x2   :  { %s14_s10 = sshll.u32 %s209_s9, 4  ;;  %s210_s11 = smov 64   ;;  %s15_s10 = int_to_ptr.vmem [resolvable:$true] %s14_s10 }
   0x3   :  { %s211_s12 = smov 4  }
   0x4   :  { %20 = dma.hbm_to_vmem [thread:$0]  %s13_s8, 128, %s15_s10, [#allocation3], %s210_s11, %s210_s11, %s211_s12  }
   0x5   :  { %205 = dma.done.wait [#allocation3], 128  }
   0x6   :  { %206 = vsyncadd [#allocation3], 4294967168  ;;  %v25_v0 = vld [vmem:[#allocation2] sm:$0xf]  ;;  %s212_s13 = smov 124   ;;  %vm97_vm4 = vcmask 27648  }
   0x7   :  { %29 = vrot.lane.b32.xlu0 %v25_v0, %s212_s13  ;;  %v26_v1 = vld [vmem:[#allocation2 + $0x4] sm:$0xf]  ;;  %s213_s0 = smov [#allocation5]   ;;  %s127_s17 = sshll.u32 %s251_s1, 4  ;;  %s128_s17 = int_to_ptr.hbm [resolvable:$true] %s127_s17 }
   0x8   :  { %s125_s14 = sshll.u32 %s213_s0, 4  ;;  %s126_s14 = int_to_ptr.vmem [resolvable:$true] %s125_s14 }
   0xf   :  { %31 = vrot.lane.b32.xlu0 %v26_v1, %s212_s13 }
  0x79   :  { %v30_v2 = vpop.permute.xlu0 %29 }
  0x7a   :  { %v35_v3 = vmax.f32 %v25_v0, %v30_v2 }
  0x7c   :  { %45 = vrot.lane.b32.xlu1 %v35_v3, %s211_s12  ;;  %v37_v14 = vsub.f32 %v25_v0, %v35_v3 }
  0x7e   :  { %v39_v15 = vmul.f32 1.442695, %v37_v14 }
  0x81   :  { %v32_v4 = vpop.permute.xlu0 %31 }
  0x82   :  { %v36_v5 = vmax.f32 %v26_v1, %v32_v4 }
  0x84   :  { %47 = vrot.lane.b32.xlu1 %v36_v5, %s211_s12  ;;  %v38_v16 = vsub.f32 %v26_v1, %v36_v5 }
  0x86   :  { %v41_v17 = vmul.f32 1.442695, %v38_v16 }
  0xee   :  { %v46_v6 = vpop.permute.xlu1 %45 }
  0xef   :  { %v51_v7 = vsub.f32 %v25_v0, %v46_v6 }
  0xf1   :  { %v53_v8 = vmul.f32 1.442695, %v51_v7 }
  0xf3   :  { %145 = vpow2.f32 %v53_v8 }
  0xf6   :  { %v48_v9 = vpop.permute.xlu1 %47 }
  0xf7   :  { %v52_v10 = vsub.f32 %v26_v1, %v48_v9 }
  0xf9   :  { %v146_v11 = vpop.eup %145  ;;  %v55_v12 = vmul.f32 1.442695, %v52_v10 }
  0xfa   :  { %59 = vrot.lane.b32.xlu2 %v146_v11, %s212_s13 }
  0xfb   :  { %147 = vpow2.f32 %v55_v12 }
  0xfc   :  { %149 = vpow2.f32 %v39_v15 }
  0xfd   :  { %151 = vpow2.f32 %v41_v17 }
 0x101   :  { %v148_v13 = vpop.eup %147 }
 0x102   :  { %61 = vrot.lane.b32.xlu2 %v148_v13, %s212_s13  ;;  %v150_v18 = vpop.eup %149 }
 0x103   :  { %v152_v21 = vpop.eup %151 }
 0x154   :  { %v60_v19 = vpop.permute.xlu2 %59 }
 0x155   :  { %v65_v20 = vadd.f32 %v150_v18, %v60_v19 }
 0x157   :  { %153 = vrcp.f32 %v65_v20  ;;  %v78_v27 = vand.u32 2147483648, %v65_v20  ;;  %v76_v29 = vand.u32 2147483647, %v65_v20  ;;  %vm72_vm1 = vweird.f32 %v65_v20 }
 0x159   :  { %v79_v32 = vor.u32 1.1754944e-38, %v78_v27  ;;  %vm77_vm3 = vcmp.eq.f32.partialorder %v76_v29, 8.507059e+37 }
 0x15c   :  { %v62_v22 = vpop.permute.xlu2 %61 }
 0x15d   :  { %v154_v23 = vpop.eup %153  ;;  %v66_v24 = vadd.f32 %v152_v21, %v62_v22 }
 0x15e   :  { %v68_v25 = vmul.f32 %v154_v23, %v65_v20  ;;  %vm73_vm0 = vweird.f32 %v154_v23 }
 0x15f   :  { %155 = vrcp.f32 %v66_v24  ;;  %vm74_vm2 = vmor %vm72_vm1, %vm73_vm0  ;;  %v92_v38 = vand.u32 2147483648, %v66_v24  ;;  %v90_v40 = vand.u32 2147483647, %v66_v24  ;;  %vm86_vm6 = vweird.f32 %v66_v24 }
 0x160   :  { %v69_v26 = vsub.f32 1.0, %v68_v25 }
 0x161   :  { %v93_v42 = vor.u32 1.1754944e-38, %v92_v38  ;;  %vm91_vm8 = vcmp.eq.f32.partialorder %v90_v40, 8.507059e+37 }
 0x162   :  { %v70_v28 = vmul.f32 %v154_v23, %v69_v26 }
 0x164   :  { %v71_v30 = vadd.f32 %v154_v23, %v70_v28 }
 0x165   :  { %v156_v31 = vpop.eup %155 }
 0x166   :  { %v75_v33 = vsel %vm74_vm2, %v154_v23, %v71_v30  ;;  %v82_v34 = vmul.f32 %v156_v31, %v66_v24  ;;  %vm87_vm5 = vweird.f32 %v156_v31 }
 0x167   :  { %v80_v35 = vsel %vm77_vm3, %v79_v32, %v75_v33  ;;  %vm88_vm7 = vmor %vm86_vm6, %vm87_vm5 }
 0x168   :  { %102 = vrot.lane.b32.xlu0 %v80_v35, %s211_s12  ;;  %v95_v36 = vmul.f32 %v150_v18, %v80_v35  ;;  %v83_v37 = vsub.f32 1.0, %v82_v34 }
 0x16a   :  { %v84_v39 = vmul.f32 %v156_v31, %v83_v37  ;;  %98 = vst.msk [vmem:[#allocation5] sm:$0xf] %vm97_vm4, %v95_v36 }
 0x16c   :  { %v85_v41 = vadd.f32 %v156_v31, %v84_v39 }
 0x16e   :  { %v89_v43 = vsel %vm88_vm7, %v156_v31, %v85_v41 }
 0x16f   :  { %v94_v44 = vsel %vm91_vm8, %v93_v42, %v89_v43 }
 0x170   :  { %104 = vrot.lane.b32.xlu1 %v94_v44, %s211_s12  ;;  %v96_v45 = vmul.f32 %v152_v21, %v94_v44 }
 0x172   :  { %99 = vst.msk [vmem:[#allocation5 + $0x8] sm:$0xf] %vm97_vm4, %v96_v45 }
 0x1da   :  { %v103_v46 = vpop.permute.xlu0 %102 }
 0x1db   :  { %v108_v47 = vmul.f32 %v146_v11, %v103_v46 }
 0x1dd   :  { %112 = vrot.lane.b32.xlu2 %v108_v47, %s212_s13 }
 0x1e2   :  { %v105_v48 = vpop.permute.xlu1 %104 }
 0x1e3   :  { %v109_v49 = vmul.f32 %v148_v13, %v105_v48 }
 0x1e5   :  { %114 = vrot.lane.b32.xlu0 %v109_v49, %s212_s13 }
 0x237   :  { %v113_v50 = vpop.permute.xlu2 %112 }
 0x238   :  { %119 = vst.msk [vmem:[#allocation5 + $0x4] sm:$0xf] %vm97_vm4, %v113_v50 }
 0x257   :  { %v115_v51 = vpop.permute.xlu0 %114 }
 0x258   :  { %120 = vst.msk [vmem:[#allocation5 + $0xc] sm:$0xf] %vm97_vm4, %v115_v51 }
 0x259   :  { %133 = dma.vmem_to_hbm [thread:$0]  %s126_s14, 256, %s128_s17, [#allocation4], %s210_s11, %s210_s11, %s211_s12  }
 0x25a   :  { %207 = dma.done.wait [#allocation4], 256  }
 0x25b   :  { %208 = vsyncadd [#allocation4], 4294967040 }
 0x25c   :  { %138 = vsyncpa [#allocation3], 1 }
 0x25d   :  { %139 = vsyncpa [#allocation4], 1 }

</bundles_post_ra>
